<compile_context>
chip_gen: v5e
topology: v5e:2x2
jax: 0.10.0
libtpu: 0.0.40
codegen_flags: <defaults>
</compile_context>

<pallas_src>
from functools import partial

import jax
import jax.numpy as jnp
from jax.experimental import pallas as pl
from jax.experimental.pallas import tpu as pltpu


_LANES = 128
_SUBLANES = 8
# Per-buffer cap (the pipeline double-buffers inputs => ~2x this resident in VMEM).
_MAX_BLOCK_BYTES = 8 * 1024 * 1024


def _choose_tiles(b, rows, itemsize, max_block_bytes):
    """Pick (TB batch-fold, TH spatial-tile rows) under the VMEM budget."""
    bytes_per_row = 3 * _LANES * itemsize
    max_rows = max(_SUBLANES,
                   (max_block_bytes // bytes_per_row) // _SUBLANES * _SUBLANES)
    if rows <= max_rows:
        th = rows          # single spatial tile; equals the full dim (no 8-align needed)
    else:
        th = max_rows      # multiple of 8 -> satisfies the (8,128) block constraint
    block_bytes = 3 * th * _LANES * itemsize
    tb = 1
    for cand in range(b, 0, -1):
        if b % cand == 0 and cand * block_bytes <= max_block_bytes:
            tb = cand
            break
    return tb, th


def _finalize_k(sums, inv_hw, out_dtype):
    """sums: (TB, 3, 1, 1) per-channel sums -> (TB, 1, 1, 1) k value."""
    mr = sums[:, 0:1] * inv_hw
    mg = sums[:, 1:2] * inv_hw
    mb = sums[:, 2:3] * inv_hw
    drg = (mr - mg) ** 2
    drb = (mr - mb) ** 2
    dgb = (mb - mg) ** 2
    k = jnp.sqrt(drg * drg + drb * drb + dgb * dgb)
    return k.astype(out_dtype)


def _l_color_kernel_single(x_ref, o_ref, *, inv_hw):
    # Whole image(s) fit in one block: no scratch, no phase predication.
    # x_ref: (TB, 3, rows, 128), o_ref: (TB, 1, 1, 1)
    x = x_ref[...].astype(jnp.float32)
    lane_sums = jnp.sum(x, axis=2, keepdims=True)            # sublane reduce
    sums = jnp.sum(lane_sums, axis=-1, keepdims=True)        # cross-lane reduce (once)
    o_ref[...] = _finalize_k(sums, inv_hw, o_ref.dtype)


def _l_color_kernel(x_ref, o_ref, acc_ref, *, inv_hw, rows, tile_rows, need_mask):
    # x_ref:   (TB, 3, TH, 128) input tile (VMEM)
    # o_ref:   (TB, 1, 1, 1)    output block (resident across the reduction axis)
    # acc_ref: (TB, 3, 1, 128)  f32 lane-wide per-channel partial sums (VMEM scratch)
    j = pl.program_id(1)

    @pl.when(j == 0)
    def _init():
        acc_ref[...] = jnp.zeros_like(acc_ref)

    x = x_ref[...].astype(jnp.float32)                        # f32 accumulation path

    if need_mask:
        # Tail tile: rows beyond the real spatial extent hold unspecified data.
        row_in_tile = jax.lax.broadcasted_iota(jnp.int32, x.shape, dimension=2)
        valid = (j * tile_rows + row_in_tile) < rows
        x = jnp.where(valid, x, 0.0)

    # Cheap per-tile sublane reduction; keep lane-wide so the expensive cross-lane
    # reduction happens only once per image, in the epilogue below.
    acc_ref[...] += jnp.sum(x, axis=2, keepdims=True)         # (TB, 3, 1, 128)

    @pl.when(j == pl.num_programs(1) - 1)
    def _finalize():
        sums = jnp.sum(acc_ref[...], axis=-1, keepdims=True)  # (TB, 3, 1, 1)
        o_ref[...] = _finalize_k(sums, inv_hw, o_ref.dtype)


def l_color(x, *, max_block_bytes=_MAX_BLOCK_BYTES):
    """Pallas implementation of L_color.forward. x: (B, 3, H, W) -> (B, 1, 1, 1)."""
    b, c, h, w = x.shape
    assert c == 3, "L_color expects 3 channels (RGB)"
    hw = h * w
    itemsize = jnp.dtype(x.dtype).itemsize

    # Present the spatial plane lane-dense: (B, 3, rows, 128).
    hw_pad = pl.cdiv(hw, _LANES) * _LANES
    flat = x.reshape(b, c, hw)
    if hw_pad != hw:
        # Zero padding is sum-neutral (we divide by the true H*W below).
        flat = jnp.pad(flat, ((0, 0), (0, 0), (0, hw_pad - hw)))
    rows = hw_pad // _LANES
    xr = flat.reshape(b, c, rows, _LANES)

    tb, th = _choose_tiles(b, rows, itemsize, max_block_bytes)
    n_tiles = pl.cdiv(rows, th)
    need_mask = (rows % th) != 0
    inv_hw = 1.0 / float(hw)

    cost = pl.CostEstimate(
        flops=b * (3 * hw + 16),
        transcendentals=b,
        bytes_accessed=b * c * hw * itemsize + b * itemsize,
    )
    cparams = pltpu.CompilerParams(
        # batch parallel (megacore sharding), spatial reduction arbitrary (accumulator)
        dimension_semantics=("parallel", "arbitrary"),
        # explicit scoped-VMEM: >= v5e's 16 MiB default, <= v7x's 64 MiB physical
        vmem_limit_bytes=32 * 1024 * 1024,
    )
    out_shape = jax.ShapeDtypeStruct((b, 1, 1, 1), x.dtype)

    if n_tiles == 1:
        # Single-tile fast path: no scratch, no phase predication.
        return pl.pallas_call(
            partial(_l_color_kernel_single, inv_hw=inv_hw),
            out_shape=out_shape,
            grid_spec=pltpu.PrefetchScalarGridSpec(
                num_scalar_prefetch=0,
                grid=(b // tb, 1),
                in_specs=[pl.BlockSpec((tb, c, th, _LANES), lambda i, j: (i, 0, j, 0))],
                out_specs=pl.BlockSpec((tb, 1, 1, 1), lambda i, j: (i, 0, 0, 0)),
            ),
            compiler_params=cparams,
            cost_estimate=cost,
        )(xr)

    kernel = partial(
        _l_color_kernel,
        inv_hw=inv_hw,
        rows=rows,
        tile_rows=th,
        need_mask=need_mask,
    )
    return pl.pallas_call(
        kernel,
        out_shape=out_shape,
        grid_spec=pltpu.PrefetchScalarGridSpec(
            num_scalar_prefetch=0,
            grid=(b // tb, n_tiles),
            in_specs=[pl.BlockSpec((tb, c, th, _LANES), lambda i, j: (i, 0, j, 0))],
            out_specs=pl.BlockSpec((tb, 1, 1, 1), lambda i, j: (i, 0, 0, 0)),
            scratch_shapes=[pltpu.VMEM((tb, c, 1, _LANES), jnp.float32)],
        ),
        compiler_params=cparams,
        cost_estimate=cost,
    )(xr)


def _l_color_ref(x):
    # Pure-JAX reference matching the PyTorch semantics.
    mean_rgb = jnp.mean(x, axis=(2, 3), keepdims=True)        # (B, 3, 1, 1)
    mr = mean_rgb[:, 0:1]
    mg = mean_rgb[:, 1:2]
    mb = mean_rgb[:, 2:3]
    drg = (mr - mg) ** 2
    drb = (mr - mb) ** 2
    dgb = (mb - mg) ** 2
    return jnp.sqrt(drg ** 2 + drb ** 2 + dgb ** 2)           # (B, 1, 1, 1)


if __name__ == "__main__":
    key = jax.random.PRNGKey(0)

    # Main small test (lane-dense, single-tile fast path, TB=2).
    B, C, H, W = 2, 3, 16, 16
    x = jax.random.uniform(key, (B, C, H, W), dtype=jnp.float32)
    out = jax.block_until_ready(l_color(x))
    ref = _l_color_ref(x)
    assert out.shape == (B, 1, 1, 1)
    assert jnp.allclose(out, ref, atol=1e-6, rtol=1e-5), (out, ref)

    # Exercise the multi-tile accumulation + masked tail path (tiny VMEM budget).
    x2 = jax.random.uniform(jax.random.PRNGKey(0), (2, 3, 40, 32), dtype=jnp.float32)
    out2 = jax.block_until_ready(l_color(x2, max_block_bytes=16 * 1024))
    assert jnp.allclose(out2, _l_color_ref(x2), atol=1e-6, rtol=1e-5), (out2,)

    # Exercise the non-128-divisible spatial size (zero-pad) path.
    x3 = jax.random.uniform(jax.random.PRNGKey(0), (2, 3, 13, 20), dtype=jnp.float32)
    out3 = jax.block_until_ready(l_color(x3))
    assert jnp.allclose(out3, _l_color_ref(x3), atol=1e-6, rtol=1e-5), (out3,)

    print("KERNEL_OK")
</pallas_src>

<mosaic_0001>
module attributes {stable_mosaic.version = 11 : i64} {
  func.func @_l_color_kernel_single(%arg0: i32, %arg1: i32, %arg2: memref<2x3x2x128xf32, #tpu.memory_space<vmem>>, %arg3: memref<2x1x1x1xf32, #tpu.memory_space<vmem>>) attributes {dimension_semantics = [#tpu.dimension_semantics<parallel>, #tpu.dimension_semantics<arbitrary>], iteration_bounds = array<i64: 1, 1>, scalar_prefetch = 0 : i64, scratch_operands = 0 : i64, tpu.core_type = #tpu.core_type<tc>, window_params = [{transform_indices = @transform_0, window_bounds = array<i64: 2, 3, 2, 128>}, {transform_indices = @transform_1, window_bounds = array<i64: 2, 1, 1, 1>}]} {
    %c0 = arith.constant 0 : index
    %c0_0 = arith.constant 0 : index
    %c0_1 = arith.constant 0 : index
    %c0_2 = arith.constant 0 : index
    %0 = vector.load %arg2[%c0, %c0_0, %c0_1, %c0_2] : memref<2x3x2x128xf32, #tpu.memory_space<vmem>>, vector<2x3x2x128xf32>
    %cst = arith.constant dense<0.000000e+00> : vector<2x3x128xf32>
    %1 = vector.multi_reduction <add>, %0, %cst [2] : vector<2x3x2x128xf32> to vector<2x3x128xf32>
    %2 = vector.shape_cast %1 : vector<2x3x128xf32> to vector<2x3x1x128xf32>
    %cst_3 = arith.constant dense<0.000000e+00> : vector<2x3x1xf32>
    %3 = vector.multi_reduction <add>, %2, %cst_3 [3] : vector<2x3x1x128xf32> to vector<2x3x1xf32>
    %4 = vector.shape_cast %3 : vector<2x3x1xf32> to vector<2x3x1x1xf32>
    %5 = vector.extract_strided_slice %4 {offsets = [0, 0, 0, 0], sizes = [2, 1, 1, 1], strides = [1, 1, 1, 1]} : vector<2x3x1x1xf32> to vector<2x1x1x1xf32>
    %cst_4 = arith.constant 3.906250e-03 : f32
    %6 = vector.broadcast %cst_4 : f32 to vector<2x1x1x1xf32>
    %7 = arith.mulf %5, %6 : vector<2x1x1x1xf32>
    %8 = vector.extract_strided_slice %4 {offsets = [0, 1, 0, 0], sizes = [2, 1, 1, 1], strides = [1, 1, 1, 1]} : vector<2x3x1x1xf32> to vector<2x1x1x1xf32>
    %cst_5 = arith.constant 3.906250e-03 : f32
    %9 = vector.broadcast %cst_5 : f32 to vector<2x1x1x1xf32>
    %10 = arith.mulf %8, %9 : vector<2x1x1x1xf32>
    %11 = vector.extract_strided_slice %4 {offsets = [0, 2, 0, 0], sizes = [2, 1, 1, 1], strides = [1, 1, 1, 1]} : vector<2x3x1x1xf32> to vector<2x1x1x1xf32>
    %cst_6 = arith.constant 3.906250e-03 : f32
    %12 = vector.broadcast %cst_6 : f32 to vector<2x1x1x1xf32>
    %13 = arith.mulf %11, %12 : vector<2x1x1x1xf32>
    %14 = arith.subf %7, %10 : vector<2x1x1x1xf32>
    %15 = arith.mulf %14, %14 : vector<2x1x1x1xf32>
    %16 = arith.subf %7, %13 : vector<2x1x1x1xf32>
    %17 = arith.mulf %16, %16 : vector<2x1x1x1xf32>
    %18 = arith.subf %13, %10 : vector<2x1x1x1xf32>
    %19 = arith.mulf %18, %18 : vector<2x1x1x1xf32>
    %20 = arith.mulf %15, %15 : vector<2x1x1x1xf32>
    %21 = arith.mulf %17, %17 : vector<2x1x1x1xf32>
    %22 = arith.addf %20, %21 : vector<2x1x1x1xf32>
    %23 = arith.mulf %19, %19 : vector<2x1x1x1xf32>
    %24 = arith.addf %22, %23 : vector<2x1x1x1xf32>
    %25 = math.sqrt %24 : vector<2x1x1x1xf32>
    %c0_7 = arith.constant 0 : index
    %c0_8 = arith.constant 0 : index
    %c0_9 = arith.constant 0 : index
    %c0_10 = arith.constant 0 : index
    %26 = vector.load %arg3[%c0_7, %c0_8, %c0_9, %c0_10] : memref<2x1x1x1xf32, #tpu.memory_space<vmem>>, vector<2x1x1x1xf32>
    tpu.vector_store %arg3[%c0_7, %c0_8, %c0_9, %c0_10], %25 {strides = array<i32>} : memref<2x1x1x1xf32, #tpu.memory_space<vmem>>, vector<2x1x1x1xf32>,
    return
  }
  func.func @transform_0(%arg0: i32, %arg1: i32) -> (i32, i32, i32, i32) {
    %c0_i32 = arith.constant 0 : i32
    %c0_i32_0 = arith.constant 0 : i32
    %c0_i32_1 = arith.constant 0 : i32
    return %arg0, %c0_i32, %arg1, %c0_i32_0 : i32, i32, i32, i32
  }
  func.func @transform_1(%arg0: i32, %arg1: i32) -> (i32, i32, i32, i32) {
    %c0_i32 = arith.constant 0 : i32
    %c0_i32_0 = arith.constant 0 : i32
    %c0_i32_1 = arith.constant 0 : i32
    %c0_i32_2 = arith.constant 0 : i32
    return %arg0, %c0_i32, %c0_i32_0, %c0_i32_1 : i32, i32, i32, i32
  }
}

</mosaic_0001>

<bundles_post_ra>
// kernel: tpu_custom_call.1
= control target key start
LH: loop header
LB: loop body
LE: loop exit
PB: predicated region body
PF: predicated region fallthrough
CT: control target
= control target key end

     0   :  { %6 = vsyncpa [#allocation3], 0  ;;  %s178_s9 = smov [#allocation2]   ;;  %s179_s11 = smov 32   ;;  %s206_s0 = inlined_call_operand.hbm [shape: f32[2,3,2,128], index: 0, kind: input, shape index: {}]   ;;  %s207_s1 = inlined_call_operand.vmem [shape: f32[2,1,1,1], index: 1, kind: output, shape index: {}]  }
   0x1   :  { %s11_s8 = sshll.u32 %s206_s0, 4  ;;  %s13_s10 = sshll.u32 %s178_s9, 4  ;;  %s12_s8 = int_to_ptr.hbm [resolvable:$true] %s11_s8  ;;  %s14_s10 = int_to_ptr.vmem [resolvable:$true] %s13_s10 }
   0x2   :  { %s180_s12 = smov 2  }
   0x3   :  { %19 = dma.hbm_to_vmem [thread:$0]  %s12_s8, 192, %s14_s10, [#allocation3], %s179_s11, %s179_s11, %s180_s12  }
   0x4   :  { %176 = dma.done.wait [#allocation3], 192  }
   0x5   :  { %177 = vsyncadd [#allocation3], 4294967104  ;;  %vm30_vm0 = vcmask 1041408   ;;  %v28_v0 = vld [vmem:[#allocation2 + $0x8] sm:$0x3]  ;;  %vm137_vm1 = vcmask 0  }
   0x6   :  { %v26_v1 = vld [vmem:[#allocation2 + $0x4] sm:$0x3]  ;;  %v24_v2 = vld [vmem:[#allocation2] sm:$0x3]  ;;  %v59_v3 = vsel %vm30_vm0, %v28_v0, 0.0 }
   0x7   :  { %v45_v4 = vsel %vm30_vm0, %v26_v1, 0.0  ;;  %v31_v5 = vsel %vm30_vm0, %v24_v2, 0.0  ;;  %v29_v6 = vld [vmem:[#allocation2 + $0xa] sm:$0x3]  ;;  %v60_v7 = vrot.slane %v59_v3, 4 }
   0x8   :  { %v46_v8 = vrot.slane %v45_v4, 4  ;;  %v32_v9 = vrot.slane %v31_v5, 4  ;;  %v66_v10 = vsel %vm30_vm0, %v29_v6, 0.0  ;;  %v27_v11 = vld [vmem:[#allocation2 + $0x6] sm:$0x3] }
   0x9   :  { %v67_v12 = vrot.slane %v66_v10, 4  ;;  %v52_v13 = vsel %vm30_vm0, %v27_v11, 0.0  ;;  %v25_v14 = vld [vmem:[#allocation2 + $0x2] sm:$0x3]  ;;  %v61_v15 = vadd.f32 %v60_v7, %v59_v3 }
   0xa   :  { %v47_v16 = vadd.f32 %v46_v8, %v45_v4  ;;  %v33_v17 = vadd.f32 %v32_v9, %v31_v5  ;;  %v53_v18 = vrot.slane %v52_v13, 4  ;;  %v38_v20 = vsel %vm30_vm0, %v25_v14, 0.0 }
   0xb   :  { %v68_v19 = vadd.f32 %v67_v12, %v66_v10  ;;  %v62_v21 = vrot.slane %v61_v15, 2  ;;  %v39_v26 = vrot.slane %v38_v20, 4 }
   0xc   :  { %v48_v22 = vrot.slane %v47_v16, 2  ;;  %v34_v23 = vrot.slane %v33_v17, 2  ;;  %v54_v24 = vadd.f32 %v53_v18, %v52_v13 }
   0xd   :  { %v69_v25 = vrot.slane %v68_v19, 2  ;;  %v63_v27 = vadd.f32 %v62_v21, %v61_v15  ;;  %v40_v32 = vadd.f32 %v39_v26, %v38_v20 }
   0xe   :  { %v49_v28 = vadd.f32 %v48_v22, %v47_v16  ;;  %v35_v29 = vadd.f32 %v34_v23, %v33_v17  ;;  %v55_v30 = vrot.slane %v54_v24, 2 }
   0xf   :  { %v70_v31 = vadd.f32 %v69_v25, %v68_v19  ;;  %v64_v33 = vrot.slane %v63_v27, 1  ;;  %v41_v37 = vrot.slane %v40_v32, 2 }
  0x10   :  { %v50_v34 = vrot.slane %v49_v28, 1  ;;  %v36_v35 = vrot.slane %v35_v29, 1  ;;  %v56_v36 = vadd.f32 %v55_v30, %v54_v24 }
  0x11   :  { %v65_v38 = vadd.f32 %v64_v33, %v63_v27  ;;  %v42_v41 = vadd.f32 %v41_v37, %v40_v32  ;;  %v71_v42 = vrot.slane %v70_v31, 1 }
  0x12   :  { %v51_v39 = vadd.f32 %v50_v34, %v49_v28  ;;  %v37_v40 = vadd.f32 %v36_v35, %v35_v29  ;;  %v57_v43 = vrot.slane %v56_v36, 1 }
  0x13   :  { %81 = vadd.xlane.f32.xlu2 %v65_v38  ;;  %v43_v44 = vrot.slane %v42_v41, 1  ;;  %v72_v45 = vadd.f32 %v71_v42, %v70_v31 }
  0x14   :  { %77 = vadd.xlane.f32.xlu1 %v51_v39  ;;  %73 = vadd.xlane.f32.xlu0 %v37_v40  ;;  %v58_v46 = vadd.f32 %v57_v43, %v56_v36 }
  0x15   :  { %v44_v47 = vadd.f32 %v43_v44, %v42_v41 }
  0x1b   :  { %83 = vadd.xlane.f32.xlu2 %v72_v45 }
  0x1c   :  { %79 = vadd.xlane.f32.xlu1 %v58_v46  ;;  %75 = vadd.xlane.f32.xlu0 %v44_v47 }
  0x86   :  { %v82_v48 = vpop.xlane.xlu2 %81 }
  0x87   :  { %v78_v49 = vpop.xlane.xlu1 %77  ;;  %v74_v50 = vpop.xlane.xlu0 %73  ;;  %v88_v56 = vmul.f32 0.00390625, %v82_v48 }
  0x88   :  { %v89_v51 = vmul.f32 0.00390625, %v78_v49  ;;  %v85_v52 = vmul.f32 0.00390625, %v74_v50 }
  0x8a   :  { %v95_v53 = vsub.f32 %v85_v52, %v89_v51 }
  0x8c   :  { %v97_v0 = vmul.f32 %v95_v53, %v95_v53 }
  0x8e   :  { %v84_v54 = vpop.xlane.xlu2 %83  ;;  %v105_v10 = vmul.f32 %v97_v0, %v97_v0 }
  0x8f   :  { %v80_v55 = vpop.xlane.xlu1 %79  ;;  %v90_v57 = vmul.f32 0.00390625, %v84_v54  ;;  %v76_v59 = vpop.xlane.xlu0 %75 }
  0x90   :  { %v86_v58 = vmul.f32 0.00390625, %v80_v55  ;;  %v87_v60 = vmul.f32 0.00390625, %v76_v59 }
  0x91   :  { %v100_v61 = vsub.f32 %v90_v57, %v88_v56 }
  0x92   :  { %v92_v62 = vsub.f32 %v86_v58, %v88_v56  ;;  %v96_v63 = vsub.f32 %v86_v58, %v90_v57  ;;  %v91_v1 = vsub.f32 %v85_v52, %v87_v60  ;;  %v99_v2 = vsub.f32 %v89_v51, %v87_v60 }
  0x93   :  { %v102_v3 = vmul.f32 %v100_v61, %v100_v61 }
  0x94   :  { %v94_v4 = vmul.f32 %v92_v62, %v92_v62  ;;  %v98_v5 = vmul.f32 %v96_v63, %v96_v63  ;;  %v93_v6 = vmul.f32 %v91_v1, %v91_v1  ;;  %v101_v7 = vmul.f32 %v99_v2, %v99_v2 }
  0x95   :  { %v110_v12 = vmul.f32 %v102_v3, %v102_v3 }
  0x96   :  { %v104_v8 = vmul.f32 %v94_v4, %v94_v4  ;;  %v106_v9 = vmul.f32 %v98_v5, %v98_v5  ;;  %v103_v11 = vmul.f32 %v93_v6, %v93_v6  ;;  %v109_v15 = vmul.f32 %v101_v7, %v101_v7 }
  0x98   :  { %v108_v13 = vadd.f32 %v106_v9, %v104_v8  ;;  %v107_v14 = vadd.f32 %v105_v10, %v103_v11 }
  0x9a   :  { %v112_v16 = vadd.f32 %v110_v12, %v108_v13  ;;  %v111_v17 = vadd.f32 %v109_v15, %v107_v14 }
  0x9c   :  { %148 = vrsqrt.f32 %v112_v16  ;;  %vm132_vm2 = vcmp.eq.f32.partialorder %v112_v16, inf  ;;  %v135_v31 = vand.u32 2147483648, %v112_v16  ;;  %vm134_vm3 = vcmp.eq.f32.partialorder %v112_v16, 0.0 }
  0x9d   :  { %150 = vrsqrt.f32 %v111_v17  ;;  %vm120_vm4 = vcmp.eq.f32.partialorder %v111_v17, inf  ;;  %v123_v34 = vand.u32 2147483648, %v111_v17  ;;  %vm122_vm5 = vcmp.eq.f32.partialorder %v111_v17, 0.0 }
  0xa2   :  { %v149_v18 = vpop.eup %148 }
  0xa3   :  { %v151_v19 = vpop.eup %150  ;;  %v126_v20 = vmul.f32 %v149_v18, %v112_v16 }
  0xa4   :  { %v114_v21 = vmul.f32 %v151_v19, %v111_v17 }
  0xa5   :  { %v127_v22 = vmul.f32 %v149_v18, %v126_v20 }
  0xa6   :  { %v115_v23 = vmul.f32 %v151_v19, %v114_v21 }
  0xa7   :  { %v128_v24 = vmul.f32 0.5, %v127_v22 }
  0xa8   :  { %v116_v25 = vmul.f32 0.5, %v115_v23 }
  0xa9   :  { %v129_v26 = vsub.f32 1.5, %v128_v24 }
  0xaa   :  { %v117_v27 = vsub.f32 1.5, %v116_v25 }
  0xab   :  { %v130_v28 = vmul.f32 %v149_v18, %v129_v26 }
  0xac   :  { %v118_v29 = vmul.f32 %v151_v19, %v117_v27 }
  0xad   :  { %v131_v30 = vmul.f32 %v130_v28, %v112_v16 }
  0xae   :  { %v119_v32 = vmul.f32 %v118_v29, %v111_v17 }
  0xaf   :  { %v133_v33 = vsel %vm132_vm2, %v112_v16, %v131_v30 }
  0xb0   :  { %v136_v35 = vsel %vm134_vm3, %v135_v31, %v133_v33  ;;  %v121_v36 = vsel %vm120_vm4, %v111_v17, %v119_v32 }
  0xb1   :  { %139 = vst.msk [vmem:[%s207_s1 + $0x1] sm:$0x1] %vm137_vm1, %v136_v35  ;;  %v124_v37 = vsel %vm122_vm5, %v123_v34, %v121_v36 }
  0xb2   :  { %138 = vst.msk [vmem:[%s207_s1] sm:$0x1] %vm137_vm1, %v124_v37 }
  0xb3   :  { %144 = vsyncpa [#allocation3], 1 }

</bundles_post_ra>
